<compile_context>
chip_gen: v5e
topology: v5e:2x2
jax: 0.10.0
libtpu: 0.0.40
codegen_flags: <defaults>
</compile_context>

<pallas_src>
import functools

import jax
import jax.numpy as jnp
from jax.experimental import pallas as pl
from jax.experimental.pallas import tpu as pltpu  # noqa: F401  (TPU backend)

P_DROP = 0.5   # self.p
N_MC = 25      # self.N
_LANE = 128


def _round_up(x, m):
    return ((x + m - 1) // m) * m


# ---------------------------------------------------------------------------
# Kernels
# ---------------------------------------------------------------------------
def _mc_dropout_fc_kernel(x_ref, bits_ref, w_ref, b_ref, denom_ref, o_ref,
                          *, keep_threshold, inv_keep_prob):
    """All MC samples at once: (dropout(x) @ W^T + b) / denom.

    x_ref:     (B, F)          features, read once
    bits_ref:  (N*B, F) uint32 one uniform draw per (sample, element)
    w_ref:     (F, C_pad)      transposed, lane-padded Linear weight
    b_ref:     (1, C_pad)      lane-padded bias
    denom_ref: (1, 1)          relu(T) for temp scaling, else 1.0
    o_ref:     (N*B, C_pad)    logits for every MC sample
    """
    n_rows, f = bits_ref.shape
    b_rows = x_ref.shape[0]
    n_samples = n_rows // b_rows

    # Inverted-dropout survivor scale applied once, before the per-sample broadcast.
    x_scaled = x_ref[...] * jnp.float32(inv_keep_prob)
    x_rep = jnp.broadcast_to(x_scaled[None, :, :], (n_samples, b_rows, f))
    x_rep = x_rep.reshape(n_rows, f)

    # Integer-domain dropout: keep with probability (1 - p).
    keep = bits_ref[...] >= jnp.uint32(keep_threshold)
    xd = jnp.where(keep, x_rep, jnp.float32(0.0))

    logits = jnp.dot(xd, w_ref[...], preferred_element_type=jnp.float32)
    o_ref[...] = ((logits + b_ref[...]) / denom_ref[...]).astype(o_ref.dtype)


def _fc_kernel(x_ref, w_ref, b_ref, denom_ref, o_ref):
    """Plain linear head (eval-mode dropout is identity): (x @ W^T + b) / denom."""
    logits = jnp.dot(x_ref[...], w_ref[...], preferred_element_type=jnp.float32)
    o_ref[...] = ((logits + b_ref[...]) / denom_ref[...]).astype(o_ref.dtype)


# ---------------------------------------------------------------------------
# Wrappers
# ---------------------------------------------------------------------------
def _pad_params(w_t, b):
    _, c = w_t.shape
    c_pad = max(_LANE, _round_up(c, _LANE))
    w_p = jnp.pad(w_t.astype(jnp.float32), ((0, 0), (0, c_pad - c)))
    b_p = jnp.pad(b.astype(jnp.float32), (0, c_pad - c)).reshape(1, c_pad)
    return w_p, b_p, c, c_pad


def fc_head(x, w_t, b, *, denom=1.0):
    """x: (B, F), w_t: (F, C), b: (C,) -> (B, C)."""
    bsz = x.shape[0]
    w_p, b_p, c, c_pad = _pad_params(w_t, b)
    d = jnp.asarray(denom, jnp.float32).reshape(1, 1)
    out = pl.pallas_call(
        _fc_kernel,
        out_shape=jax.ShapeDtypeStruct((bsz, c_pad), jnp.float32),
    )(x.astype(jnp.float32), w_p, b_p, d)
    return out[:, :c]


def mc_dropout_head(x, w_t, b, key, *, n_samples=N_MC, p_drop=P_DROP, denom=1.0):
    """x: (B, F) -> (n_samples, B, C); dropout mask re-sampled per MC sample."""
    bsz, f = x.shape
    w_p, b_p, c, c_pad = _pad_params(w_t, b)
    d = jnp.asarray(denom, jnp.float32).reshape(1, 1)

    # One uint32 draw for all samples (single stream, no per-sample reseed).
    bits = jax.random.bits(key, (n_samples * bsz, f), dtype=jnp.uint32)
    thr = min(int(round(p_drop * 2.0 ** 32)), 2 ** 32 - 1)

    kernel = functools.partial(_mc_dropout_fc_kernel,
                               keep_threshold=thr,
                               inv_keep_prob=1.0 / (1.0 - p_drop))
    out = pl.pallas_call(
        kernel,
        out_shape=jax.ShapeDtypeStruct((n_samples * bsz, c_pad), jnp.float32),
    )(x.astype(jnp.float32), bits, w_p, b_p, d)
    return out.reshape(n_samples, bsz, c_pad)[:, :, :c]


def bayesian_net_forward(features, params, *, temp_scale=False, bayesian=False,
                         training=True, rng_key=None):
    """Mirrors BayesianNet.forward, consuming post-backbone features (B, F)."""
    if rng_key is None:
        rng_key = jax.random.PRNGKey(0)
    w_t, b, t_param = params["w_t"], params["b"], params["T"]

    if not temp_scale:
        if not bayesian:
            if training:
                # F.dropout(training=True) + fc  ==  one MC sample.
                return mc_dropout_head(features, w_t, b, rng_key, n_samples=1)[0]
            return fc_head(features, w_t, b)
        return mc_dropout_head(features, w_t, b, rng_key, n_samples=N_MC)

    # Temperature scaling: divide logits by relu(T) inside the kernel epilogue.
    # (Same divide-by-zero hazard as the torch code if T <= 0.)
    relu_t = jnp.maximum(t_param, jnp.float32(0.0))
    if not bayesian:
        return fc_head(features, w_t, b, denom=relu_t)   # eval dropout = identity
    return mc_dropout_head(features, w_t, b, rng_key, n_samples=N_MC, denom=relu_t)


# ---------------------------------------------------------------------------
# Demo
# ---------------------------------------------------------------------------
if __name__ == "__main__":
    B = 8            # batch (sublane-aligned)
    F_IN = 256       # small stand-in for resnet fc_in_features (lane-aligned)
    NUM_CLASSES = 16

    key = jax.random.PRNGKey(0)
    kw, kb, kx, kd1, kd2, kd3 = jax.random.split(key, 6)

    # torch.nn.Linear(F_IN, NUM_CLASSES): weight (C, F), bias (C,). Store W^T = (F, C).
    w = jax.random.normal(kw, (NUM_CLASSES, F_IN), jnp.float32) * 0.02
    b = jax.random.normal(kb, (NUM_CLASSES,), jnp.float32) * 0.01
    params = {"w_t": w.T, "b": b, "T": jnp.float32(1.0)}

    # Post-backbone features (stand-in for self._model(x) output).
    feats = jax.random.normal(kx, (B, F_IN), jnp.float32)

    # 1) default path (training=True): dropout + fc
    logits = bayesian_net_forward(feats, params, training=True, rng_key=kd1)
    # 2) bayesian path: (N, B, C) MC samples
    mc = bayesian_net_forward(feats, params, bayesian=True, rng_key=kd2)
    # 3) temp-scaled deterministic path
    scaled = bayesian_net_forward(feats, params, temp_scale=True)
    # 4) temp-scaled bayesian path
    scaled_mc = bayesian_net_forward(feats, params, temp_scale=True,
                                     bayesian=True, rng_key=kd3)

    jax.block_until_ready((logits, mc, scaled, scaled_mc))

    assert logits.shape == (B, NUM_CLASSES)
    assert mc.shape == (N_MC, B, NUM_CLASSES)
    assert scaled.shape == (B, NUM_CLASSES)
    assert scaled_mc.shape == (N_MC, B, NUM_CLASSES)

    # Loose cross-check of the deterministic temp-scaled path against plain jnp.
    ref = (feats @ params["w_t"] + params["b"]) / jnp.maximum(params["T"], 0.0)
    assert jnp.allclose(scaled, ref, atol=1e-2, rtol=1e-2)

    print("KERNEL_OK")
</pallas_src>

<mosaic_0001>
module attributes {stable_mosaic.version = 11 : i64} {
  func.func @_mc_dropout_fc_kernel(%arg0: memref<8x256xf32, #tpu.memory_space<vmem>>, %arg1: memref<8x256xi32, #tpu.memory_space<vmem>>, %arg2: memref<256x128xf32, #tpu.memory_space<vmem>>, %arg3: memref<1x128xf32, #tpu.memory_space<vmem>>, %arg4: memref<1x1xf32, #tpu.memory_space<vmem>>, %arg5: memref<8x128xf32, #tpu.memory_space<vmem>>) attributes {dimension_semantics = [], scalar_prefetch = 0 : i64, scratch_operands = 0 : i64, tpu.core_type = #tpu.core_type<tc>} {
    %c0 = arith.constant 0 : index
    %c0_0 = arith.constant 0 : index
    %0 = vector.load %arg0[%c0, %c0_0] : memref<8x256xf32, #tpu.memory_space<vmem>>, vector<8x256xf32>
    %cst = arith.constant 2.000000e+00 : f32
    %1 = vector.broadcast %cst : f32 to vector<8x256xf32>
    %2 = arith.mulf %0, %1 : vector<8x256xf32>
    %3 = vector.shape_cast %2 : vector<8x256xf32> to vector<1x8x256xf32>
    %4 = vector.shape_cast %3 : vector<1x8x256xf32> to vector<8x256xf32>
    %c0_1 = arith.constant 0 : index
    %c0_2 = arith.constant 0 : index
    %5 = vector.load %arg1[%c0_1, %c0_2] : memref<8x256xi32, #tpu.memory_space<vmem>>, vector<8x256xi32>
    %c-2147483648_i32 = arith.constant -2147483648 : i32
    %6 = vector.broadcast %c-2147483648_i32 : i32 to vector<8x256xi32>
    %7 = arith.cmpi uge, %5, %6 : vector<8x256xi32>
    %cst_3 = arith.constant 0.000000e+00 : f32
    %8 = vector.broadcast %cst_3 : f32 to vector<8x256xf32>
    %9 = arith.select %7, %4, %8 : vector<8x256xi1>, vector<8x256xf32>
    %c0_4 = arith.constant 0 : index
    %c0_5 = arith.constant 0 : index
    %10 = vector.load %arg2[%c0_4, %c0_5] : memref<256x128xf32, #tpu.memory_space<vmem>>, vector<256x128xf32>
    %cst_6 = arith.constant dense<0.000000e+00> : vector<8x128xf32>
    %11 = tpu.matmul %9, %10, %cst_6 {dimension_numbers = #tpu.dot_dimension_numbers<[1], [0], [0], [1], [0, 0, 1, 1], [], []>} : vector<8x256xf32>, vector<256x128xf32>, vector<8x128xf32> -> vector<8x128xf32>
    %c0_7 = arith.constant 0 : index
    %c0_8 = arith.constant 0 : index
    %12 = vector.load %arg3[%c0_7, %c0_8] : memref<1x128xf32, #tpu.memory_space<vmem>>, vector<1x128xf32>
    %13 = vector.broadcast %12 : vector<1x128xf32> to vector<8x128xf32>
    %14 = arith.addf %11, %13 : vector<8x128xf32>
    %c0_9 = arith.constant 0 : index
    %c0_10 = arith.constant 0 : index
    %15 = vector.load %arg4[%c0_9, %c0_10] : memref<1x1xf32, #tpu.memory_space<vmem>>, vector<1x1xf32>
    %16 = vector.broadcast %15 : vector<1x1xf32> to vector<8x128xf32>
    %17 = arith.divf %14, %16 : vector<8x128xf32>
    %c0_11 = arith.constant 0 : index
    %c0_12 = arith.constant 0 : index
    %18 = vector.load %arg5[%c0_11, %c0_12] : memref<8x128xf32, #tpu.memory_space<vmem>>, vector<8x128xf32>
    tpu.vector_store %arg5[%c0_11, %c0_12], %17 {strides = array<i32>} : memref<8x128xf32, #tpu.memory_space<vmem>>, vector<8x128xf32>,
    return
  }
}

</mosaic_0001>

<bundles_post_ra>
// kernel: tpu_custom_call.1
= control target key start
LH: loop header
LB: loop body
LE: loop exit
PB: predicated region body
PF: predicated region fallthrough
CT: control target
= control target key end

     0   :  { %s370_s0 = inlined_call_operand.hbm [shape: f32[8,256], index: 0, kind: input, shape index: {}]   ;;  %s371_s1 = inlined_call_operand.hbm [shape: u32[8,256], index: 1, kind: input, shape index: {}]   ;;  %s372_s2 = inlined_call_operand.hbm [shape: f32[256,128], index: 2, kind: input, shape index: {}]   ;;  %s373_s3 = inlined_call_operand.vmem [shape: f32[1,128], index: 3, kind: input, shape index: {}]   ;;  %s374_s4 = inlined_call_operand.<no memory space> [shape: f32[1,1], index: 4, kind: input, shape index: {}]   ;;  %s375_s5 = inlined_call_operand.hbm [shape: f32[8,128], index: 5, kind: output, shape index: {}]  }
   0x1   :  { %v10_v0 = vstv %s374_s4 }
   0x2   :  { %11 = vst [vmem:[#allocation2] sm:$0x1] %v10_v0 }
   0x3   :  { %12 = vsyncpa [#allocation4], 0 }
   0x4   :  { %13 = vsyncpa [#allocation7], 0  ;;  %s31_s22 = sshll.u32 %s371_s1, 4  ;;  %s32_s22 = int_to_ptr.hbm [resolvable:$true] %s31_s22 }
   0x5   :  { %14 = vsyncpa [#allocation5], 0  ;;  %s315_s23 = smov [#allocation6]   ;;  %s20_s27 = sshll.u32 %s370_s0, 4  ;;  %s21_s27 = int_to_ptr.hbm [resolvable:$true] %s20_s27 }
   0x6   :  { %s33_s24 = sshll.u32 %s315_s23, 4  ;;  %s316_s28 = smov [#allocation3]   ;;  %s34_s24 = int_to_ptr.vmem [resolvable:$true] %s33_s24 }
   0x7   :  { %36 = dma.hbm_to_vmem [thread:$0]  %s32_s22, 256, %s34_s24, [#allocation7]  }
   0x8   :  { %s22_s4 = sshll.u32 %s316_s28, 4  ;;  %s41_s6 = sshll.u32 %s372_s2, 4  ;;  %s23_s4 = int_to_ptr.vmem [resolvable:$true] %s22_s4  ;;  %s42_s6 = int_to_ptr.hbm [resolvable:$true] %s41_s6 }
   0x9   :  { %25 = dma.hbm_to_vmem [thread:$0]  %s21_s27, 256, %s23_s4, [#allocation4]  }
   0xa   :  { %s317_s1 = smov [#allocation8]   ;;  %s318_s8 = smov 128  }
   0xb   :  { %s43_s7 = sshll.u32 %s317_s1, 4  ;;  %s319_s9 = smov 8   ;;  %s44_s7 = int_to_ptr.vmem [resolvable:$true] %s43_s7 }
   0xc   :  { %49 = dma.hbm_to_vmem [thread:$0]  %s42_s6, 4096, %s44_s7, [#allocation7], %s318_s8, %s318_s8, %s319_s9  }
   0xd   :  { %309 = dma.done.wait [#allocation4], 256  }
   0xe   :  { %310 = vsyncadd [#allocation4], 4294967040 }
   0xf   :  { %311 = dma.done.wait [#allocation7], 4352  }
  0x10   :  { %312 = vsyncadd [#allocation7], 4294962944  ;;  %v320_v1 = vmov 0   ;;  %v95_v2 = vld [vmem:[#allocation8 + $0x78] sm:$0xff]  ;;  %v94_v3 = vld [vmem:[#allocation8 + $0x70] sm:$0xff]  ;;  %s321_s10 = smov [#allocation9]  }
  0x11   :  { %208 = vset.pattern.permute.xlu0 %v320_v1  ;;  %v111_v4 = vld [vmem:[#allocation8 + $0xf8] sm:$0xff]  ;;  %116 = vmatpush.msra.mxu0 %v95_v2  ;;  %v110_v5 = vld [vmem:[#allocation8 + $0xf0] sm:$0xff]  ;;  %v93_v6 = vld [vmem:[#allocation8 + $0x68] sm:$0xff]  ;;  %s184_s11 = sshll.u32 %s321_s10, 4  ;;  %s186_s14 = sshll.u32 %s375_s5, 4  ;;  %s185_s11 = int_to_ptr.vmem [resolvable:$true] %s184_s11  ;;  %s187_s14 = int_to_ptr.hbm [resolvable:$true] %s186_s14 }
  0x12   :  { %136 = vmatpush.msra.mxu1 %v111_v4  ;;  %v109_v7 = vld [vmem:[#allocation8 + $0xe8] sm:$0xff]  ;;  %v92_v8 = vld [vmem:[#allocation8 + $0x60] sm:$0xff]  ;;  %v209_v10 = vld [vmem:[#allocation2] ss:$0 sm:$0xff] }
  0x13   :  { %117 = vmatpush.msra.mxu0 %v94_v3  ;;  %v108_v9 = vld [vmem:[#allocation8 + $0xe0] sm:$0xff]  ;;  %v91_v11 = vld [vmem:[#allocation8 + $0x58] sm:$0xff]  ;;  %v90_v13 = vld [vmem:[#allocation8 + $0x50] sm:$0xff]  ;;  %160 = vperm.xlu0 %208, %v209_v10  }
  0x14   :  { %137 = vmatpush.msra.mxu1 %v110_v5  ;;  %v107_v12 = vld [vmem:[#allocation8 + $0xd8] sm:$0xff]  ;;  %v106_v14 = vld [vmem:[#allocation8 + $0xd0] sm:$0xff]  ;;  %v89_v15 = vld [vmem:[#allocation8 + $0x48] sm:$0xff] }
  0x15   :  { %118 = vmatpush.msra.mxu0 %v93_v6  ;;  %v105_v16 = vld [vmem:[#allocation8 + $0xc8] sm:$0xff]  ;;  %v88_v17 = vld [vmem:[#allocation8 + $0x40] sm:$0xff]  ;;  %v87_v19 = vld [vmem:[#allocation8 + $0x38] sm:$0xff] }
  0x16   :  { %138 = vmatpush.msra.mxu1 %v109_v7  ;;  %v104_v18 = vld [vmem:[#allocation8 + $0xc0] sm:$0xff]  ;;  %v103_v20 = vld [vmem:[#allocation8 + $0xb8] sm:$0xff]  ;;  %v86_v21 = vld [vmem:[#allocation8 + $0x30] sm:$0xff] }
  0x17   :  { %119 = vmatpush.msra.mxu0 %v92_v8  ;;  %v102_v22 = vld [vmem:[#allocation8 + $0xb0] sm:$0xff]  ;;  %v85_v23 = vld [vmem:[#allocation8 + $0x28] sm:$0xff]  ;;  %v84_v25 = vld [vmem:[#allocation8 + $0x20] sm:$0xff] }
  0x18   :  { %139 = vmatpush.msra.mxu1 %v108_v9  ;;  %v101_v24 = vld [vmem:[#allocation8 + $0xa8] sm:$0xff]  ;;  %v100_v26 = vld [vmem:[#allocation8 + $0xa0] sm:$0xff]  ;;  %v83_v27 = vld [vmem:[#allocation8 + $0x18] sm:$0xff] }
  0x19   :  { %120 = vmatpush.msra.mxu0 %v91_v11  ;;  %v99_v28 = vld [vmem:[#allocation8 + $0x98] sm:$0xff]  ;;  %v70_v29 = vld [vmem:[#allocation6] sm:$0xff]  ;;  %v66_v33 = vld [vmem:[#allocation3] sm:$0xff] }
  0x1a   :  { %140 = vmatpush.msra.mxu1 %v107_v12  ;;  %v71_v30 = vld [vmem:[#allocation6 + $0x8] sm:$0xff]  ;;  %v82_v31 = vld [vmem:[#allocation8 + $0x10] sm:$0xff]  ;;  %v197_v34 = vxor.u32 2147483648, %v70_v29  ;;  %v67_v35 = vld [vmem:[#allocation3 + $0x8] sm:$0xff]  ;;  %v68_v40 = vmul.f32 2.0, %v66_v33 }
  0x1b   :  { %121 = vmatpush.msra.mxu0 %v90_v13  ;;  %v98_v32 = vld [vmem:[#allocation8 + $0x90] sm:$0xff]  ;;  %v198_v36 = vxor.u32 2147483648, %v71_v30  ;;  %v81_v37 = vld [vmem:[#allocation8 + $0x8] sm:$0xff]  ;;  %v80_v39 = vld [vmem:[#allocation8] sm:$0xff]  ;;  %v69_v42 = vmul.f32 2.0, %v67_v35 }
  0x1c   :  { %141 = vmatpush.msra.mxu1 %v106_v14  ;;  %v97_v38 = vld [vmem:[#allocation8 + $0x88] sm:$0xff]  ;;  %v96_v41 = vld [vmem:[#allocation8 + $0x80] sm:$0xff]  ;;  %vm74_vm0 = vcmp.ge.s32.totalorder %v197_v34, 0  ;;  %v210_v50 = vld [vmem:[%s373_s3] ss:$0 sm:$0xff] }
  0x1d   :  { %122 = vmatpush.msra.mxu0 %v89_v15  ;;  %vm77_vm1 = vcmp.ge.s32.totalorder %v198_v36, 0 }
  0x1e   :  { %142 = vmatpush.msra.mxu1 %v105_v16 }
  0x1f   :  { %123 = vmatpush.msra.mxu0 %v88_v17 }
  0x20   :  { %143 = vmatpush.msra.mxu1 %v104_v18 }
  0x21   :  { %124 = vmatpush.msra.mxu0 %v87_v19 }
  0x22   :  { %144 = vmatpush.msra.mxu1 %v103_v20 }
  0x23   :  { %125 = vmatpush.msra.mxu0 %v86_v21 }
  0x24   :  { %145 = vmatpush.msra.mxu1 %v102_v22 }
  0x25   :  { %126 = vmatpush.msra.mxu0 %v85_v23 }
  0x26   :  { %146 = vmatpush.msra.mxu1 %v101_v24 }
  0x27   :  { %127 = vmatpush.msra.mxu0 %v84_v25 }
  0x28   :  { %147 = vmatpush.msra.mxu1 %v100_v26 }
  0x29   :  { %128 = vmatpush.msra.mxu0 %v83_v27 }
  0x2a   :  { %148 = vmatpush.msra.mxu1 %v99_v28 }
  0x2b   :  { %129 = vmatpush.msra.mxu0 %v82_v31 }
  0x2c   :  { %149 = vmatpush.msra.mxu1 %v98_v32 }
  0x2d   :  { %130 = vmatpush.msra.mxu0 %v81_v37 }
  0x2e   :  { %150 = vmatpush.msra.mxu1 %v97_v38 }
  0x2f   :  { %131 = vmatpush.msra.mxu0 %v80_v39 }
  0x30   :  { %151 = vmatpush.msra.mxu1 %v96_v41  ;;  %199 = vmatmul.msk.f32.vlgmr.msra.gmra.mxu0 %vm74_vm0, %v68_v40 }
  0x31   :  { %200 = vmatmul.msk.f32.vlgmr.msra.gmra.mxu1 %vm77_vm1, %v69_v42 }
  0x85   :  { %v161_v43 = vpop.permute.xlu0 %160 }
  0x86   :  { %211 = vrcp.f32 %v161_v43  ;;  %vm168_vm2 = vweird.f32 %v161_v43  ;;  %v174_v48 = vand.u32 2147483648, %v161_v43  ;;  %v172_v49 = vand.u32 2147483647, %v161_v43 }
  0x88   :  { %v175_v52 = vor.u32 1.1754944e-38, %v174_v48  ;;  %vm173_vm5 = vcmp.eq.f32.partialorder %v172_v49, 8.507059e+37 }
  0x8c   :  { %v212_v44 = vpop.eup %211 }
  0x8d   :  { %v164_v45 = vmul.f32 %v212_v44, %v161_v43  ;;  %vm169_vm3 = vweird.f32 %v212_v44 }
  0x8e   :  { %vm170_vm4 = vmor %vm168_vm2, %vm169_vm3 }
  0x8f   :  { %v165_v46 = vsub.f32 1.0, %v164_v45 }
  0x91   :  { %v166_v47 = vmul.f32 %v212_v44, %v165_v46 }
  0x93   :  { %v167_v51 = vadd.f32 %v212_v44, %v166_v47 }
  0x95   :  { %v171_v56 = vsel %vm170_vm4, %v212_v44, %v167_v51 }
  0x96   :  { %v176_v58 = vsel %vm173_vm5, %v175_v52, %v171_v56 }
  0xad   :  { %v133_v53 = vpop.f32.mrf.mxu0 }
  0xae   :  { %v153_v54 = vpop.f32.mrf.mxu1  ;;  %v134_v55 = vadd.f32 %v210_v50, %v133_v53 }
  0xb0   :  { %v154_v57 = vadd.f32 %v153_v54, %v134_v55 }
  0xb2   :  { %v177_v59 = vmul.f32 %v176_v58, %v154_v57 }
  0xb4   :  { %178 = vst [vmem:[#allocation9] sm:$0xff] %v177_v59 }
  0xb5   :  { %189 = dma.vmem_to_hbm [thread:$0]  %s185_s11, 128, %s187_s14, [#allocation5]  }
  0xb6   :  { %313 = dma.done.wait [#allocation5], 128  }
  0xb7   :  { %314 = vsyncadd [#allocation5], 4294967168 }
  0xb8   :  { %194 = vsyncpa [#allocation4], 1 }
  0xb9   :  { %195 = vsyncpa [#allocation7], 1 }
  0xba   :  { %196 = vsyncpa [#allocation5], 1 }

</bundles_post_ra>
